<compile_context>
chip_gen: v7x
topology: tpu7x:2x2x1
jax: 0.10.0
libtpu: 0.0.40
codegen_flags: <defaults>
</compile_context>

<pallas_src>
import functools

import jax
import jax.numpy as jnp
from jax.experimental import pallas as pl
from jax.experimental.pallas import tpu as pltpu

_LANE = 256             # lane-dense last dim (multiple of 128)
_MAX_TILE_ROWS = 2048   # (2048, 256): ~22 MiB double-buffered across 7 streams
_VMEM_LIMIT_BYTES = 48 << 20  # explicit scoped-VMEM limit; < 64 MiB v7x physical


def _round_up(n, m):
    return -(-n // m) * m


def _elementwise_kernel(mask_dtype):
    def kernel(x_ref, add_ref, sub_ref, mul_ref, div_ref, gt_ref, lt_ref):
        x = x_ref[...]
        add_ref[...] = x + 5.0
        sub_ref[...] = x - 3.0
        mul_ref[...] = x * 2.0
        div_ref[...] = x * 0.25          # exact: /4 == *0.25 in f32, stays on VALU
        gt_ref[...] = (x > 1.0).astype(mask_dtype)
        lt_ref[...] = (x < 10.0).astype(mask_dtype)
    return kernel


def _run_tiled(x2d, tile_rows, mask_dtype):
    rows, lane = x2d.shape
    grid = (pl.cdiv(rows, tile_rows),)   # ragged last block handled by Pallas
    blk = pl.BlockSpec((tile_rows, lane), lambda i: (i, 0))
    out_shapes = (
        jax.ShapeDtypeStruct((rows, lane), x2d.dtype),   # add
        jax.ShapeDtypeStruct((rows, lane), x2d.dtype),   # sub
        jax.ShapeDtypeStruct((rows, lane), x2d.dtype),   # mul
        jax.ShapeDtypeStruct((rows, lane), x2d.dtype),   # div
        jax.ShapeDtypeStruct((rows, lane), mask_dtype),  # gt mask
        jax.ShapeDtypeStruct((rows, lane), mask_dtype),  # lt mask
    )
    return pl.pallas_call(
        _elementwise_kernel(mask_dtype),
        out_shape=out_shapes,
        grid=grid,
        in_specs=[blk],
        out_specs=(blk,) * 6,
        compiler_params=pltpu.CompilerParams(
            dimension_semantics=("parallel",),
            vmem_limit_bytes=_VMEM_LIMIT_BYTES,
            allow_input_fusion=[True],   # let the pad/reshape fuse into input DMA
        ),
    )(x2d)


@functools.lru_cache(maxsize=1)
def _multi_tensorcore():
    """True only on generations where one Pallas grid spans >1 TensorCore (v7x)."""
    try:
        kind = jax.devices()[0].device_kind.lower()
    except Exception:
        return False
    return "v7" in kind


@functools.lru_cache(maxsize=1)
def _bool_mask_supported():
    """One-time compile-only probe: can Mosaic lower bool VMEM outputs here?"""
    try:
        probe = jax.ShapeDtypeStruct((32, _LANE), jnp.float32)
        jax.jit(lambda a: _run_tiled(a, 32, jnp.bool_)).lower(probe).compile()
        return True
    except Exception:
        # Compile-only probe on a tiny dummy (never executed); the real kernel
        # call is never wrapped in this catch, so runtime bugs are not masked.
        return False


@functools.partial(jax.jit, static_argnames=("mask_bool",))
def _forward_impl(x, mask_bool):
    orig_shape = x.shape
    total = x.size

    rows_needed = max(1, pl.cdiv(total, _LANE))
    # Pad rows only to a multiple of 32 (packed int8/bool vreg stores), NOT to a
    # tile multiple: wasted HBM traffic is bounded by <32 rows.
    padded_rows = _round_up(rows_needed, 32)

    tile_rows = min(_MAX_TILE_ROWS, padded_rows)
    # Force >=2 grid steps only on multi-TensorCore chips (v7x); on single-TC
    # v5e/v6e a split just adds per-step overhead.
    if _multi_tensorcore() and padded_rows > 32 and pl.cdiv(padded_rows, tile_rows) < 2:
        tile_rows = max(32, _round_up(pl.cdiv(padded_rows, 2), 32))

    pad = padded_rows * _LANE - total
    xf = x.reshape(-1)
    if pad:
        xf = jnp.pad(xf, (0, pad))
    x2d = xf.reshape(padded_rows, _LANE)

    mask_dtype = jnp.bool_ if mask_bool else jnp.int8
    add_r, sub_r, mul_r, div_r, gt_r, lt_r = _run_tiled(x2d, tile_rows, mask_dtype)

    def _unpad(a, to_bool=False):
        a = a.reshape(-1)
        if pad:
            a = a[:total]
        a = a.reshape(orig_shape)
        if to_bool and a.dtype != jnp.bool_:
            a = a.astype(jnp.bool_)   # fallback path: fuses with the unpad slice
        return a

    return (
        _unpad(add_r),
        _unpad(sub_r),
        _unpad(mul_r),
        _unpad(div_r),
        _unpad(gt_r, to_bool=True),
        _unpad(lt_r, to_bool=True),
    )


def pt_module_forward(x):
    """Reproduces PtModule.forward: (x+5, x-3, x*2, x/4, x>1, x<10)."""
    return _forward_impl(x, mask_bool=_bool_mask_supported())


if __name__ == "__main__":
    key = jax.random.PRNGKey(0)
    # Small NCHW-style input consistent with the module's elementwise forward.
    x = jax.random.uniform(key, (2, 4, 16, 16), dtype=jnp.float32,
                           minval=-5.0, maxval=15.0)

    outs = jax.block_until_ready(pt_module_forward(x))

    # Reference check against plain JAX semantics.
    refs = (x + 5, x - 3, x * 2, x / 4, x > 1, x < 10)
    for got, ref in zip(outs, refs):
        assert got.shape == ref.shape, (got.shape, ref.shape)
        assert got.dtype == ref.dtype, (got.dtype, ref.dtype)
        if got.dtype == jnp.bool_:
            assert bool(jnp.all(got == ref))
        else:
            assert bool(jnp.allclose(got, ref, atol=1e-6))

    print("KERNEL_OK")
</pallas_src>

<mosaic_0001>
module attributes {stable_mosaic.version = 11 : i64} {
  func.func @kernel(%arg0: i32, %arg1: memref<32x256xf32, #tpu.memory_space<vmem>>, %arg2: memref<32x256xf32, #tpu.memory_space<vmem>>, %arg3: memref<32x256xf32, #tpu.memory_space<vmem>>, %arg4: memref<32x256xf32, #tpu.memory_space<vmem>>, %arg5: memref<32x256xf32, #tpu.memory_space<vmem>>, %arg6: memref<32x256xi8, #tpu.memory_space<vmem>>, %arg7: memref<32x256xi8, #tpu.memory_space<vmem>>) attributes {dimension_semantics = [#tpu.dimension_semantics<parallel>], iteration_bounds = array<i64: 1>, scalar_prefetch = 0 : i64, scratch_operands = 0 : i64, tpu.core_type = #tpu.core_type<tc>, window_params = [{transform_indices = @transform_0, window_bounds = array<i64: 32, 256>}, {transform_indices = @transform_1, window_bounds = array<i64: 32, 256>}, {transform_indices = @transform_2, window_bounds = array<i64: 32, 256>}, {transform_indices = @transform_3, window_bounds = array<i64: 32, 256>}, {transform_indices = @transform_4, window_bounds = array<i64: 32, 256>}, {transform_indices = @transform_5, window_bounds = array<i64: 32, 256>}, {transform_indices = @transform_6, window_bounds = array<i64: 32, 256>}]} {
    %c0 = arith.constant 0 : index
    %c0_0 = arith.constant 0 : index
    %0 = vector.load %arg1[%c0, %c0_0] : memref<32x256xf32, #tpu.memory_space<vmem>>, vector<32x256xf32>
    %cst = arith.constant 5.000000e+00 : f32
    %1 = vector.broadcast %cst : f32 to vector<32x256xf32>
    %2 = arith.addf %0, %1 : vector<32x256xf32>
    %c0_1 = arith.constant 0 : index
    %c0_2 = arith.constant 0 : index
    %3 = vector.load %arg2[%c0_1, %c0_2] : memref<32x256xf32, #tpu.memory_space<vmem>>, vector<32x256xf32>
    tpu.vector_store %arg2[%c0_1, %c0_2], %2 {strides = array<i32>} : memref<32x256xf32, #tpu.memory_space<vmem>>, vector<32x256xf32>,
    %cst_3 = arith.constant 3.000000e+00 : f32
    %4 = vector.broadcast %cst_3 : f32 to vector<32x256xf32>
    %5 = arith.subf %0, %4 : vector<32x256xf32>
    %c0_4 = arith.constant 0 : index
    %c0_5 = arith.constant 0 : index
    %6 = vector.load %arg3[%c0_4, %c0_5] : memref<32x256xf32, #tpu.memory_space<vmem>>, vector<32x256xf32>
    tpu.vector_store %arg3[%c0_4, %c0_5], %5 {strides = array<i32>} : memref<32x256xf32, #tpu.memory_space<vmem>>, vector<32x256xf32>,
    %cst_6 = arith.constant 2.000000e+00 : f32
    %7 = vector.broadcast %cst_6 : f32 to vector<32x256xf32>
    %8 = arith.mulf %0, %7 : vector<32x256xf32>
    %c0_7 = arith.constant 0 : index
    %c0_8 = arith.constant 0 : index
    %9 = vector.load %arg4[%c0_7, %c0_8] : memref<32x256xf32, #tpu.memory_space<vmem>>, vector<32x256xf32>
    tpu.vector_store %arg4[%c0_7, %c0_8], %8 {strides = array<i32>} : memref<32x256xf32, #tpu.memory_space<vmem>>, vector<32x256xf32>,
    %cst_9 = arith.constant 2.500000e-01 : f32
    %10 = vector.broadcast %cst_9 : f32 to vector<32x256xf32>
    %11 = arith.mulf %0, %10 : vector<32x256xf32>
    %c0_10 = arith.constant 0 : index
    %c0_11 = arith.constant 0 : index
    %12 = vector.load %arg5[%c0_10, %c0_11] : memref<32x256xf32, #tpu.memory_space<vmem>>, vector<32x256xf32>
    tpu.vector_store %arg5[%c0_10, %c0_11], %11 {strides = array<i32>} : memref<32x256xf32, #tpu.memory_space<vmem>>, vector<32x256xf32>,
    %cst_12 = arith.constant 1.000000e+00 : f32
    %13 = vector.broadcast %cst_12 : f32 to vector<32x256xf32>
    %14 = arith.cmpf ogt, %0, %13 : vector<32x256xf32>
    %15 = arith.extui %14 : vector<32x256xi1> to vector<32x256xi8>
    %c0_13 = arith.constant 0 : index
    %c0_14 = arith.constant 0 : index
    %16 = vector.load %arg6[%c0_13, %c0_14] : memref<32x256xi8, #tpu.memory_space<vmem>>, vector<32x256xi8>
    tpu.vector_store %arg6[%c0_13, %c0_14], %15 {strides = array<i32>} : memref<32x256xi8, #tpu.memory_space<vmem>>, vector<32x256xi8>,
    %cst_15 = arith.constant 1.000000e+01 : f32
    %17 = vector.broadcast %cst_15 : f32 to vector<32x256xf32>
    %18 = arith.cmpf olt, %0, %17 : vector<32x256xf32>
    %19 = arith.extui %18 : vector<32x256xi1> to vector<32x256xi8>
    %c0_16 = arith.constant 0 : index
    %c0_17 = arith.constant 0 : index
    %20 = vector.load %arg7[%c0_16, %c0_17] : memref<32x256xi8, #tpu.memory_space<vmem>>, vector<32x256xi8>
    tpu.vector_store %arg7[%c0_16, %c0_17], %19 {strides = array<i32>} : memref<32x256xi8, #tpu.memory_space<vmem>>, vector<32x256xi8>,
    return
  }
  func.func @transform_0(%arg0: i32) -> (i32, i32) {
    %c0_i32 = arith.constant 0 : i32
    %c0_i32_0 = arith.constant 0 : i32
    return %arg0, %c0_i32 : i32, i32
  }
  func.func @transform_1(%arg0: i32) -> (i32, i32) {
    %c0_i32 = arith.constant 0 : i32
    %c0_i32_0 = arith.constant 0 : i32
    return %arg0, %c0_i32 : i32, i32
  }
  func.func @transform_2(%arg0: i32) -> (i32, i32) {
    %c0_i32 = arith.constant 0 : i32
    %c0_i32_0 = arith.constant 0 : i32
    return %arg0, %c0_i32 : i32, i32
  }
  func.func @transform_3(%arg0: i32) -> (i32, i32) {
    %c0_i32 = arith.constant 0 : i32
    %c0_i32_0 = arith.constant 0 : i32
    return %arg0, %c0_i32 : i32, i32
  }
  func.func @transform_4(%arg0: i32) -> (i32, i32) {
    %c0_i32 = arith.constant 0 : i32
    %c0_i32_0 = arith.constant 0 : i32
    return %arg0, %c0_i32 : i32, i32
  }
  func.func @transform_5(%arg0: i32) -> (i32, i32) {
    %c0_i32 = arith.constant 0 : i32
    %c0_i32_0 = arith.constant 0 : i32
    return %arg0, %c0_i32 : i32, i32
  }
  func.func @transform_6(%arg0: i32) -> (i32, i32) {
    %c0_i32 = arith.constant 0 : i32
    %c0_i32_0 = arith.constant 0 : i32
    return %arg0, %c0_i32 : i32, i32
  }
}

</mosaic_0001>

<bundles_post_ra>
// kernel: _forward_impl.1
= control target key start
LH: loop header
LB: loop body
LE: loop exit
PB: predicated region body
PF: predicated region fallthrough
CT: control target
= control target key end

     0   :  { %v193_v40 = vmov 0   ;;  %s447_s0 = inlined_call_operand.vmem [shape: f32[32,256], index: 0, kind: input, shape index: {}]   ;;  %s448_s1 = inlined_call_operand.vmem [shape: f32[32,256], index: 1, kind: output, shape index: {0}]   ;;  %s449_s2 = inlined_call_operand.vmem [shape: f32[32,256], index: 2, kind: output, shape index: {1}]   ;;  %s450_s3 = inlined_call_operand.vmem [shape: f32[32,256], index: 3, kind: output, shape index: {2}]   ;;  %s451_s4 = inlined_call_operand.vmem [shape: f32[32,256], index: 4, kind: output, shape index: {3}]   ;;  %s452_s5 = inlined_call_operand.vmem [shape: s8[32,256], index: 5, kind: output, shape index: {4}]   ;;  %s453_s6 = inlined_call_operand.vmem [shape: s8[32,256], index: 6, kind: output, shape index: {5}]  }
   0x1   :  { %v232_v0 = vld [vmem:[%s447_s0] sm:$0xff]  ;;  %v237_v1 = vld [vmem:[%s447_s0 + $0x8] sm:$0xff]  ;;  %v242_v2 = vld [vmem:[%s447_s0 + $0x10] sm:$0xff] }
   0x2   :  { %v24_v3 = vadd.f32 5.0, %v232_v0  ;;  %v25_v4 = vadd.f32 5.0, %v237_v1  ;;  %v26_v5 = vadd.f32 5.0, %v242_v2  ;;  %v250_v6 = vld [vmem:[%s447_s0 + $0x18] sm:$0xff]  ;;  %v255_v7 = vld [vmem:[%s447_s0 + $0x20] sm:$0xff]  ;;  %v260_v8 = vld [vmem:[%s447_s0 + $0x28] sm:$0xff] }
   0x3   :  { %v27_v9 = vadd.f32 5.0, %v250_v6  ;;  %v28_v10 = vadd.f32 5.0, %v255_v7  ;;  %v29_v11 = vadd.f32 5.0, %v260_v8  ;;  %v268_v12 = vld [vmem:[%s447_s0 + $0x30] sm:$0xff]  ;;  %v273_v13 = vld [vmem:[%s447_s0 + $0x38] sm:$0xff]  ;;  %v184_v14 = vadd.f32 -3.0, %v232_v0 }
   0x4   :  { %32 = vst [vmem:[%s448_s1] sm:$0xff] %v24_v3  ;;  %33 = vst [vmem:[%s448_s1 + $0x8] sm:$0xff] %v25_v4  ;;  %v30_v15 = vadd.f32 5.0, %v268_v12  ;;  %v31_v16 = vadd.f32 5.0, %v273_v13  ;;  %v185_v17 = vadd.f32 -3.0, %v237_v1  ;;  %v186_v18 = vadd.f32 -3.0, %v242_v2 }
   0x5   :  { %34 = vst [vmem:[%s448_s1 + $0x10] sm:$0xff] %v26_v5  ;;  %35 = vst [vmem:[%s448_s1 + $0x18] sm:$0xff] %v27_v9  ;;  %v187_v19 = vadd.f32 -3.0, %v250_v6  ;;  %v188_v20 = vadd.f32 -3.0, %v255_v7  ;;  %v189_v21 = vadd.f32 -3.0, %v260_v8  ;;  %v190_v22 = vadd.f32 -3.0, %v268_v12 }
   0x6   :  { %36 = vst [vmem:[%s448_s1 + $0x20] sm:$0xff] %v28_v10  ;;  %37 = vst [vmem:[%s448_s1 + $0x28] sm:$0xff] %v29_v11  ;;  %v191_v23 = vadd.f32 -3.0, %v273_v13  ;;  %v56_v24 = vmul.f32 2.0, %v232_v0  ;;  %v57_v25 = vmul.f32 2.0, %v237_v1  ;;  %v58_v26 = vmul.f32 2.0, %v242_v2 }
   0x7   :  { %48 = vst [vmem:[%s449_s2] sm:$0xff] %v184_v14  ;;  %38 = vst [vmem:[%s448_s1 + $0x30] sm:$0xff] %v30_v15  ;;  %v59_v27 = vmul.f32 2.0, %v250_v6  ;;  %v60_v28 = vmul.f32 2.0, %v255_v7  ;;  %v61_v29 = vmul.f32 2.0, %v260_v8  ;;  %v62_v30 = vmul.f32 2.0, %v268_v12 }
   0x8   :  { %39 = vst [vmem:[%s448_s1 + $0x38] sm:$0xff] %v31_v16  ;;  %49 = vst [vmem:[%s449_s2 + $0x8] sm:$0xff] %v185_v17  ;;  %v63_v31 = vmul.f32 2.0, %v273_v13  ;;  %v72_v32 = vmul.f32 0.25, %v232_v0  ;;  %v73_v33 = vmul.f32 0.25, %v237_v1  ;;  %v74_v34 = vmul.f32 0.25, %v242_v2 }
   0x9   :  { %50 = vst [vmem:[%s449_s2 + $0x10] sm:$0xff] %v186_v18  ;;  %51 = vst [vmem:[%s449_s2 + $0x18] sm:$0xff] %v187_v19  ;;  %v75_v35 = vmul.f32 0.25, %v250_v6  ;;  %v76_v36 = vmul.f32 0.25, %v255_v7  ;;  %v77_v37 = vmul.f32 0.25, %v260_v8  ;;  %v78_v38 = vmul.f32 0.25, %v268_v12 }
   0xa   :  { %52 = vst [vmem:[%s449_s2 + $0x20] sm:$0xff] %v188_v20  ;;  %53 = vst [vmem:[%s449_s2 + $0x28] sm:$0xff] %v189_v21  ;;  %v79_v39 = vmul.f32 0.25, %v273_v13  ;;  %vm88_vm0 = vcmp.gt.f32.partialorder %v232_v0, 1.0  ;;  %vm90_vm1 = vcmp.gt.f32.partialorder %v242_v2, 1.0  ;;  %vm89_vm2 = vcmp.gt.f32.partialorder %v237_v1, 1.0 }
   0xb   :  { %54 = vst [vmem:[%s449_s2 + $0x30] sm:$0xff] %v190_v22  ;;  %55 = vst [vmem:[%s449_s2 + $0x38] sm:$0xff] %v191_v23  ;;  %vm91_vm3 = vcmp.gt.f32.partialorder %v250_v6, 1.0  ;;  %vm92_vm4 = vcmp.gt.f32.partialorder %v255_v7, 1.0  ;;  %vm94_vm5 = vcmp.gt.f32.partialorder %v268_v12, 1.0  ;;  %vm93_vm7 = vcmp.gt.f32.partialorder %v260_v8, 1.0 }
   0xc   :  { %64 = vst [vmem:[%s450_s3] sm:$0xff] %v56_v24  ;;  %65 = vst [vmem:[%s450_s3 + $0x8] sm:$0xff] %v57_v25  ;;  %vm95_vm8 = vcmp.gt.f32.partialorder %v273_v13, 1.0  ;;  %vm124_vm12 = vcmp.lt.f32.partialorder %v232_v0, 10.0  ;;  %vm126_vm13 = vcmp.lt.f32.partialorder %v242_v2, 10.0  ;;  %vm125_vm15 = vcmp.lt.f32.partialorder %v237_v1, 10.0 }
   0xd   :  { %66 = vst [vmem:[%s450_s3 + $0x10] sm:$0xff] %v58_v26  ;;  %67 = vst [vmem:[%s450_s3 + $0x18] sm:$0xff] %v59_v27 }
   0xe   :  { %68 = vst [vmem:[%s450_s3 + $0x20] sm:$0xff] %v60_v28  ;;  %69 = vst [vmem:[%s450_s3 + $0x28] sm:$0xff] %v61_v29 }
   0xf   :  { %70 = vst [vmem:[%s450_s3 + $0x30] sm:$0xff] %v62_v30  ;;  %71 = vst [vmem:[%s450_s3 + $0x38] sm:$0xff] %v63_v31 }
  0x10   :  { %80 = vst [vmem:[%s451_s4] sm:$0xff] %v72_v32  ;;  %81 = vst [vmem:[%s451_s4 + $0x8] sm:$0xff] %v73_v33 }
  0x11   :  { %82 = vst [vmem:[%s451_s4 + $0x10] sm:$0xff] %v74_v34  ;;  %83 = vst [vmem:[%s451_s4 + $0x18] sm:$0xff] %v75_v35 }
  0x12   :  { %84 = vst [vmem:[%s451_s4 + $0x20] sm:$0xff] %v76_v36  ;;  %85 = vst [vmem:[%s451_s4 + $0x28] sm:$0xff] %v77_v37 }
  0x13   :  { %86 = vst [vmem:[%s451_s4 + $0x30] sm:$0xff] %v78_v38  ;;  %vm96_vm6 = vmpackc.low %vm90_vm1, %vm88_vm0  ;;  %vm128_vm0 = vcmp.lt.f32.partialorder %v255_v7, 10.0  ;;  %vm130_vm1 = vcmp.lt.f32.partialorder %v268_v12, 10.0 }
  0x14   :  { %87 = vst [vmem:[%s451_s4 + $0x38] sm:$0xff] %v79_v39  ;;  %vm97_vm9 = vmpackc.low %vm94_vm5, %vm92_vm4  ;;  %vm131_vm5 = vcmp.lt.f32.partialorder %v273_v13, 10.0 }
  0x15   :  { %vm98_vm10 = vmpackc.even %vm97_vm9, %vm96_vm6 }
  0x16   :  { %vm99_vm11 = vmpackc.low %vm91_vm3, %vm89_vm2  ;;  %v102_v41 = vsel %vm98_vm10, 16843009, %v193_v40  ;;  %vm127_vm2 = vcmp.lt.f32.partialorder %v250_v6, 10.0  ;;  %vm129_vm3 = vcmp.lt.f32.partialorder %v260_v8, 10.0 }
  0x17   :  { %vm100_vm14 = vmpackc.low %vm95_vm8, %vm93_vm7  ;;  %v104_v42 = vunpack.c.0.s8 %v102_v41  ;;  %v106_v43 = vunpack.c.1.s8 %v102_v41  ;;  %v108_v44 = vunpack.c.2.s8 %v102_v41  ;;  %v110_v45 = vunpack.c.3.s8 %v102_v41 }
  0x18   :  { %vm101_vm4 = vmpackc.even %vm100_vm14, %vm99_vm11 }
  0x19   :  { %v103_v46 = vsel %vm101_vm4, 16843009, %v193_v40  ;;  %vm132_vm6 = vmpackc.low %vm126_vm13, %vm124_vm12 }
  0x1a   :  { %v105_v47 = vunpack.c.0.s8 %v103_v46  ;;  %v107_v48 = vunpack.c.1.s8 %v103_v46  ;;  %v109_v49 = vunpack.c.2.s8 %v103_v46  ;;  %v111_v50 = vunpack.c.3.s8 %v103_v46  ;;  %vm133_vm7 = vmpackc.low %vm130_vm1, %vm128_vm0 }
  0x1b   :  { %vm134_vm8 = vmpackc.even %vm133_vm7, %vm132_vm6 }
  0x1c   :  { %v112_v51 = vpack.c.b16 %v105_v47, %v104_v42  ;;  %v114_v52 = vpack.c.b16 %v107_v48, %v106_v43  ;;  %v116_v53 = vpack.c.b16 %v109_v49, %v108_v44  ;;  %v118_v54 = vpack.c.b16 %v111_v50, %v110_v45  ;;  %vm135_vm9 = vmpackc.low %vm127_vm2, %vm125_vm15 }
  0x1d   :  { %vm136_vm10 = vmpackc.low %vm131_vm5, %vm129_vm3  ;;  %v138_v55 = vsel %vm134_vm8, 16843009, %v193_v40 }
  0x1e   :  { %v113_v56 = vpack.c.b8 %v112_v51, %v112_v51  ;;  %v115_v57 = vpack.c.b8 %v114_v52, %v114_v52  ;;  %v117_v58 = vpack.c.b8 %v116_v53, %v116_v53  ;;  %v119_v59 = vpack.c.b8 %v118_v54, %v118_v54  ;;  %vm137_vm11 = vmpackc.even %vm136_vm10, %vm135_vm9 }
  0x1f   :  { %v139_v60 = vsel %vm137_vm11, 16843009, %v193_v40  ;;  %v140_v61 = vunpack.c.0.s8 %v138_v55  ;;  %v142_v62 = vunpack.c.1.s8 %v138_v55  ;;  %v144_v63 = vunpack.c.2.s8 %v138_v55 }
  0x20   :  { %120 = vst [vmem:[%s452_s5] sm:$0xf] %v113_v56  ;;  %121 = vst [vmem:[%s452_s5 + $0x4] sm:$0xf] %v115_v57  ;;  %v141_v0 = vunpack.c.0.s8 %v139_v60  ;;  %v143_v1 = vunpack.c.1.s8 %v139_v60  ;;  %v145_v2 = vunpack.c.2.s8 %v139_v60  ;;  %v146_v3 = vunpack.c.3.s8 %v138_v55 }
  0x21   :  { %122 = vst [vmem:[%s452_s5 + $0x8] sm:$0xf] %v117_v58  ;;  %123 = vst [vmem:[%s452_s5 + $0xc] sm:$0xf] %v119_v59  ;;  %v147_v4 = vunpack.c.3.s8 %v139_v60 }
  0x22   :  { %v148_v5 = vpack.c.b16 %v141_v0, %v140_v61  ;;  %v150_v6 = vpack.c.b16 %v143_v1, %v142_v62  ;;  %v152_v7 = vpack.c.b16 %v145_v2, %v144_v63 }
  0x23   :  { %v154_v8 = vpack.c.b16 %v147_v4, %v146_v3 }
  0x24   :  { %v149_v9 = vpack.c.b8 %v148_v5, %v148_v5  ;;  %v151_v10 = vpack.c.b8 %v150_v6, %v150_v6  ;;  %v153_v11 = vpack.c.b8 %v152_v7, %v152_v7 }
  0x25   :  { %v155_v12 = vpack.c.b8 %v154_v8, %v154_v8 }
  0x26   :  { %156 = vst [vmem:[%s453_s6] sm:$0xf] %v149_v9  ;;  %157 = vst [vmem:[%s453_s6 + $0x4] sm:$0xf] %v151_v10 }
  0x27   :  { %158 = vst [vmem:[%s453_s6 + $0x8] sm:$0xf] %v153_v11  ;;  %159 = vst [vmem:[%s453_s6 + $0xc] sm:$0xf] %v155_v12 }

</bundles_post_ra>
